<compile_context>
chip_gen: v6e
topology: v6e:2x2x1
jax: 0.10.0
libtpu: 0.0.40
codegen_flags: <defaults>
</compile_context>

<pallas_src>
import jax
import jax.numpy as jnp
import numpy as np
from jax.experimental import pallas as pl
from jax.experimental.pallas import tpu as pltpu

SQRT3 = float(np.sqrt(3.0))
HALF_PI = float(np.pi / 2.0)

TILE_MAX = 2048  # rows per grid step (multiple of 8; ~a few MiB of VMEM double-buffered)


def _round_up(x: int, m: int) -> int:
    return ((x + m - 1) // m) * m


def _ffm_kernel(x_ref, w2_ref, phase_ref, o_ref):
    # x_ref:     [tile_n, in_features]
    # w2_ref:    [in_features, 2*out_features]  (W.T duplicated, feats_scale folded in)
    # phase_ref: [1, 2*out_features]            (0 | pi/2 row: cos(z) == sin(z + pi/2))
    # o_ref:     [tile_n, 2*out_features]
    z = jnp.dot(x_ref[...], w2_ref[...], preferred_element_type=jnp.float32)
    o_ref[...] = (jnp.sin(z + phase_ref[...]) * SQRT3).astype(o_ref.dtype)


def prepare_ffm_params(w, feats_scale=1.0):
    """One-time parameter prep (do this at module init, not per forward call).

    w: torch-layout linear weight [out_features, in_features].
    Returns:
      w2    = concat(W.T, W.T, axis=1) * feats_scale   [in_f, 2*out_f]
      phase = [0]*out_f ++ [pi/2]*out_f                [1, 2*out_f]
    """
    w_t = jnp.asarray(w, dtype=jnp.float32).T  # [in_features, out_features]
    w2 = jnp.concatenate((w_t, w_t), axis=1) * float(feats_scale)
    out_features = w_t.shape[1]
    phase = jnp.concatenate(
        (jnp.zeros((1, out_features), jnp.float32),
         jnp.full((1, out_features), HALF_PI, jnp.float32)),
        axis=1,
    )
    return w2, phase


def fourier_feature_map(x, w2, phase, *, tile_n=None, out_dtype=None):
    """x: [N, in_features]; (w2, phase) from prepare_ffm_params."""
    N, in_features = x.shape
    in_f2, two_out = w2.shape
    assert in_f2 == in_features
    assert phase.shape == (1, two_out)
    if out_dtype is None:
        out_dtype = x.dtype  # pass jnp.bfloat16 to halve HBM writeback (v5e/v6e) if tolerated

    if tile_n is None:
        # Cap at TILE_MAX to amortize per-step overhead, but split the batch in
        # (at least) two so v7x's second TensorCore has work; multiple of 8 for
        # the f32 sublane constraint.  Grid is cdiv -> final block may be ragged.
        tile_n = min(TILE_MAX, _round_up(max(pl.cdiv(N, 2), 1), 8))
    assert tile_n % 8 == 0, "tile_n must be a multiple of 8 (f32 sublane tiling)"

    grid = (pl.cdiv(N, tile_n),)  # ragged last block: padded reads, masked writes

    out = pl.pallas_call(
        _ffm_kernel,
        out_shape=jax.ShapeDtypeStruct((N, two_out), out_dtype),
        grid_spec=pltpu.PrefetchScalarGridSpec(
            num_scalar_prefetch=0,
            grid=grid,
            in_specs=[
                pl.BlockSpec((tile_n, in_features), lambda i: (i, 0)),
                pl.BlockSpec((in_features, two_out), lambda i: (0, 0)),
                pl.BlockSpec((1, two_out), lambda i: (0, 0)),
            ],
            out_specs=pl.BlockSpec((tile_n, two_out), lambda i: (i, 0)),
        ),
        compiler_params=pltpu.CompilerParams(
            dimension_semantics=("parallel",),   # shards grid across v7x's 2 TCs
            vmem_limit_bytes=32 * 1024 * 1024,   # plenty of headroom at tile_n<=2048
        ),
    )(x, w2, phase)

    return out


def reference(x, w, feats_scale):
    """Pure-JAX reference matching the PyTorch module (weight in torch layout)."""
    z = (x @ jnp.asarray(w).T) * feats_scale
    return jnp.concatenate((jnp.sin(z) * SQRT3, jnp.cos(z) * SQRT3), axis=-1)


if __name__ == "__main__":
    # Module config (synthetic, deterministic init — no checkpoint load).
    in_features = 32
    out_features = 64
    feats_scale = 0.5   # feats_scale must be numeric (None would error in torch too)
    init_sigma = 1.0    # emulate weight.normal_(init_sigma): mean=init_sigma, std=1

    key = jax.random.PRNGKey(0)
    kw, kx1, kx2, kx3 = jax.random.split(key, 4)

    # torch nn.Linear weight layout: [out_features, in_features]
    w = init_sigma + jax.random.normal(kw, (out_features, in_features), dtype=jnp.float32)
    # One-time parameter prep (duplicate + fold feats_scale, build phase row).
    w2, phase = prepare_ffm_params(w, feats_scale)

    # Case 1: tiny batch (as asserted 2-D input in _ffeats) -> single grid step.
    N1 = 8
    x1 = jax.random.normal(kx1, (N1, in_features), dtype=jnp.float32)
    out1 = jax.block_until_ready(fourier_feature_map(x1, w2, phase))
    ref1 = reference(x1, w, feats_scale)
    np.testing.assert_allclose(np.asarray(out1), np.asarray(ref1), rtol=1e-5, atol=1e-5)
    assert out1.shape == (N1, 2 * out_features)

    # Case 2: row count not a tile multiple -> exercises the ragged final block
    # (no pad/slice copies anymore).
    N2 = 17
    x2 = jax.random.normal(kx2, (N2, in_features), dtype=jnp.float32)
    out2 = jax.block_until_ready(fourier_feature_map(x2, w2, phase))
    ref2 = reference(x2, w, feats_scale)
    np.testing.assert_allclose(np.asarray(out2), np.asarray(ref2), rtol=1e-5, atol=1e-5)
    assert out2.shape == (N2, 2 * out_features)

    # Case 3: moderate batch -> >= 2 grid steps with a masked tail block.
    N3 = 300
    x3 = jax.random.normal(kx3, (N3, in_features), dtype=jnp.float32)
    out3 = jax.block_until_ready(fourier_feature_map(x3, w2, phase))
    ref3 = reference(x3, w, feats_scale)
    np.testing.assert_allclose(np.asarray(out3), np.asarray(ref3), rtol=1e-5, atol=1e-5)
    assert out3.shape == (N3, 2 * out_features)

    print("KERNEL_OK")
</pallas_src>

<mosaic_0001>
module attributes {stable_mosaic.version = 11 : i64} {
  func.func @_ffm_kernel(%arg0: i32, %arg1: memref<8x32xf32, #tpu.memory_space<vmem>>, %arg2: memref<32x128xf32, #tpu.memory_space<vmem>>, %arg3: memref<1x128xf32, #tpu.memory_space<vmem>>, %arg4: memref<8x128xf32, #tpu.memory_space<vmem>>) attributes {dimension_semantics = [#tpu.dimension_semantics<parallel>], iteration_bounds = array<i64: 1>, scalar_prefetch = 0 : i64, scratch_operands = 0 : i64, tpu.core_type = #tpu.core_type<tc>, window_params = [{transform_indices = @transform_0, window_bounds = array<i64: 8, 32>}, {pipeline_mode = #tpu.pipeline_mode<synchronous>, transform_indices = @transform_1, window_bounds = array<i64: 32, 128>}, {pipeline_mode = #tpu.pipeline_mode<synchronous>, transform_indices = @transform_2, window_bounds = array<i64: 1, 128>}, {transform_indices = @transform_3, window_bounds = array<i64: 8, 128>}]} {
    %c0 = arith.constant 0 : index
    %c0_0 = arith.constant 0 : index
    %0 = vector.load %arg1[%c0, %c0_0] : memref<8x32xf32, #tpu.memory_space<vmem>>, vector<8x32xf32>
    %c0_1 = arith.constant 0 : index
    %c0_2 = arith.constant 0 : index
    %1 = vector.load %arg2[%c0_1, %c0_2] : memref<32x128xf32, #tpu.memory_space<vmem>>, vector<32x128xf32>
    %cst = arith.constant dense<0.000000e+00> : vector<8x128xf32>
    %2 = tpu.matmul %0, %1, %cst {dimension_numbers = #tpu.dot_dimension_numbers<[1], [0], [0], [1], [0, 0, 1, 1], [], []>} : vector<8x32xf32>, vector<32x128xf32>, vector<8x128xf32> -> vector<8x128xf32>
    %c0_3 = arith.constant 0 : index
    %c0_4 = arith.constant 0 : index
    %3 = vector.load %arg3[%c0_3, %c0_4] : memref<1x128xf32, #tpu.memory_space<vmem>>, vector<1x128xf32>
    %4 = vector.broadcast %3 : vector<1x128xf32> to vector<8x128xf32>
    %5 = arith.addf %2, %4 : vector<8x128xf32>
    %6 = math.sin %5 : vector<8x128xf32>
    %cst_5 = arith.constant 1.73205078 : f32
    %7 = vector.broadcast %cst_5 : f32 to vector<8x128xf32>
    %8 = arith.mulf %6, %7 : vector<8x128xf32>
    %c0_6 = arith.constant 0 : index
    %c0_7 = arith.constant 0 : index
    %9 = vector.load %arg4[%c0_6, %c0_7] : memref<8x128xf32, #tpu.memory_space<vmem>>, vector<8x128xf32>
    tpu.vector_store %arg4[%c0_6, %c0_7], %8 {strides = array<i32>} : memref<8x128xf32, #tpu.memory_space<vmem>>, vector<8x128xf32>,
    return
  }
  func.func @transform_0(%arg0: i32) -> (i32, i32) {
    %c0_i32 = arith.constant 0 : i32
    %c0_i32_0 = arith.constant 0 : i32
    return %arg0, %c0_i32 : i32, i32
  }
  func.func @transform_1(%arg0: i32) -> (i32, i32) {
    %c0_i32 = arith.constant 0 : i32
    %c0_i32_0 = arith.constant 0 : i32
    %c0_i32_1 = arith.constant 0 : i32
    return %c0_i32, %c0_i32_0 : i32, i32
  }
  func.func @transform_2(%arg0: i32) -> (i32, i32) {
    %c0_i32 = arith.constant 0 : i32
    %c0_i32_0 = arith.constant 0 : i32
    %c0_i32_1 = arith.constant 0 : i32
    return %c0_i32, %c0_i32_0 : i32, i32
  }
  func.func @transform_3(%arg0: i32) -> (i32, i32) {
    %c0_i32 = arith.constant 0 : i32
    %c0_i32_0 = arith.constant 0 : i32
    return %arg0, %c0_i32 : i32, i32
  }
}

</mosaic_0001>

<bundles_post_ra>
// kernel: tpu_custom_call.1
= control target key start
LH: loop header
LB: loop body
LE: loop exit
PB: predicated region body
PF: predicated region fallthrough
CT: control target
= control target key end

     0   :  { %8 = vsyncpa [#allocation3], 0  ;;  %s424_s0 = inlined_call_operand.hbm [shape: f32[8,32], index: 0, kind: input, shape index: {}]   ;;  %s425_s1 = inlined_call_operand.hbm [shape: f32[32,128], index: 1, kind: input, shape index: {}]   ;;  %s426_s2 = inlined_call_operand.vmem [shape: f32[1,128], index: 2, kind: input, shape index: {}]   ;;  %s427_s3 = inlined_call_operand.hbm [shape: f32[8,128], index: 3, kind: output, shape index: {}]  }
   0x1   :  { %9 = vsyncpa [#allocation6], 0 }
   0x2   :  { %10 = vsyncpa [#allocation4], 0  ;;  %s358_s12 = smov [#allocation2]   ;;  %s359_s14 = smov [#allocation5]  }
   0x3   :  { %s17_s13 = sshll.u32 %s358_s12, 4  ;;  %s26_s15 = sshll.u32 %s359_s14, 4  ;;  %s18_s13 = int_to_ptr.vmem [resolvable:$true] %s17_s13  ;;  %s27_s15 = int_to_ptr.vmem [resolvable:$true] %s26_s15 }
   0x4   :  { %s300_s16 = scalar_lea.vmem %s18_s13, 128  ;;  %p305_p1 = scmp.lt.s32.totalorder %s18_s13, %s18_s13 }
   0x5   :  { %p301_p0 = scmp.ne.s32.totalorder %s18_s13, %s300_s16  ;;  %p306_p2 = scmp.lt.s32.totalorder %s300_s16, %s300_s16 }
   0x7   :  { %p307_p3 = por %p306_p2, %p305_p1 }
   0x9   :  { %p308_p4 = pnand %p307_p3, %p301_p0 }
   0xb   :  { %311 = shalt.err (!%p308_p4)
}
   0xc   :  { %20 = dma.hbm_to_vmem [thread:$0]  %s424_s0, 128, %s18_s13, [#allocation3]  }
   0xd   :  { %s320_s19 = scalar_lea.vmem %s27_s15, 512  ;;  %p325_p6 = scmp.lt.s32.totalorder %s27_s15, %s27_s15 }
   0xe   :  { %p321_p5 = scmp.ne.s32.totalorder %s27_s15, %s320_s19  ;;  %p326_p7 = scmp.lt.s32.totalorder %s320_s19, %s320_s19 }
  0x10   :  { %p327_p8 = por %p326_p7, %p325_p6 }
  0x12   :  { %p328_p9 = pnand %p327_p8, %p321_p5 }
  0x14   :  { %331 = shalt.err (!%p328_p9)
}
  0x15   :  { %s360_s20 = smov 128   ;;  %s361_s21 = smov 8  }
  0x16   :  { %32 = dma.hbm_to_vmem [thread:$0]  %s425_s1, 512, %s27_s15, [#allocation6], %s360_s20, %s360_s20, %s361_s21  }
  0x17   :  { %352 = dma.done.wait [#allocation3], 128  }
  0x18   :  { %353 = vsyncadd [#allocation3], 4294967168 }
  0x19   :  { %354 = dma.done.wait [#allocation6], 512  }
  0x1a   :  { %355 = vsyncadd [#allocation6], 4294966784  ;;  %v362_v0 = vmov 0.0   ;;  %vm363_vm0 = vmmov 0   ;;  %v45_v1 = vld [vmem:[#allocation5 + $0x18] sm:$0xff]  ;;  %v44_v2 = vld [vmem:[#allocation5 + $0x10] sm:$0xff] }
  0x1b   :  { %260 = vmatprep.subr.mxu0 %v362_v0  ;;  %268 = vmatprep.mubr.msk.f32.mxu0 %vm363_vm0, %v362_v0  ;;  %v43_v3 = vld [vmem:[#allocation5 + $0x8] sm:$0xff]  ;;  %v42_v4 = vld [vmem:[#allocation5] sm:$0xff]  ;;  %v41_v5 = vld [vmem:[#allocation2] sm:$0xff]  ;;  %vm53_vm1 = vcmask 261120   ;;  %v364_v20 = vmov 683565275  }
  0x1c   :  { %261 = vmatpush3.msra.mxu0 %v45_v1  ;;  %v249_v6 = vld [vmem:[%s426_s2] ss:$0 sm:$0xff]  ;;  %v365_v22 = vmov 2475754826   ;;  %v366_v25 = vmov 2131351028  }
  0x1d   :  { %262 = vmatprep.subr.mxu0 %v362_v0  ;;  %v367_v28 = vmov 2102212464   ;;  %v368_v31 = vmov 920167782   ;;  %v369_v34 = vmov 1326507024  }
  0x1e   :  { %263 = vmatpush3.msra.mxu0 %v44_v2  ;;  %s370_s2 = smov [#allocation7]  }
  0x1f   :  { %264 = vmatprep.subr.mxu0 %v362_v0  ;;  %s239_s24 = sshll.u32 %s370_s2, 4  ;;  %s240_s24 = int_to_ptr.vmem [resolvable:$true] %s239_s24 }
  0x20   :  { %265 = vmatpush3.msra.mxu0 %v43_v3  ;;  %s332_s25 = scalar_lea.vmem %s240_s24, 128  ;;  %p337_p11 = scmp.lt.s32.totalorder %s240_s24, %s240_s24 }
  0x21   :  { %266 = vmatprep.subr.mxu0 %v362_v0  ;;  %p333_p10 = scmp.ne.s32.totalorder %s240_s24, %s332_s25  ;;  %p338_p12 = scmp.lt.s32.totalorder %s332_s25, %s332_s25 }
  0x22   :  { %267 = vmatpush3.msra.mxu0 %v42_v4 }
  0x23   :  { %269 = vmatmul.mubr.msk.f32.vlgmr.msra.gmra.mxu0 %vm53_vm1, %v41_v5  ;;  %p339_p13 = por %p338_p12, %p337_p11 }
  0x25   :  { %p340_p0 = pnand %p339_p13, %p333_p10 }
  0xe3   :  { %v123_v7 = vpop.f32.mrf.mxu0 }
  0xe4   :  { %v400_v8 = vadd.f32 %v249_v6, %v123_v7 }
  0xe5   :  { %v270_v9 = vpop.f32.mrf.mxu0 }
  0xe6   :  { %v130_v10 = vand.u32 2139095040, %v400_v8  ;;  %v127_v14 = vand.u32 2147483647, %v400_v8  ;;  %vm129_vm9 = vcmp.lt.s32.totalorder %v400_v8, 0  ;;  %vm219_vm14 = vweird.f32 %v400_v8 }
  0xe8   :  { %v131_v11 = vshrl.u32 %v130_v10, 23  ;;  %v134_v17 = vand.u32 8388607, %v127_v14  ;;  %vm128_vm10 = vcmp.le.f32.partialorder %v127_v14, 0.7853982 }
  0xea   :  { %v251_v12 = vadd.s32 4294967169, %v131_v11  ;;  %v135_v36 = vor.u32 8388608, %v134_v17 }
  0xec   :  { %v137_v13 = vadd.s32 1, %v251_v12  ;;  %v175_v50 = vshll.u32 %v135_v36, 8 }
  0xee   :  { %vm138_vm2 = vcmp.gt.s32.totalorder %v137_v13, 0 }
  0xef   :  { %v139_v15 = vsel %vm138_vm2, %v137_v13, 0 }
  0xf0   :  { %v141_v16 = vand.u32 31, %v139_v15  ;;  %v140_v19 = vshrl.u32 %v139_v15, 5 }
  0xf2   :  { %v142_v18 = vsub.s32 32, %v141_v16  ;;  %v144_v21 = vshll.u32 %v364_v20, %v141_v16  ;;  %v147_v23 = vshll.u32 %v365_v22, %v141_v16  ;;  %v150_v27 = vshll.u32 %v366_v25, %v141_v16 }
  0xf3   :  { %v153_v30 = vshll.u32 %v367_v28, %v141_v16  ;;  %v156_v33 = vshll.u32 %v368_v31, %v141_v16  ;;  %vm159_vm3 = vcmp.lt.s32.totalorder %v140_v19, 1  ;;  %vm162_vm4 = vcmp.lt.s32.totalorder %v140_v19, 4 }
  0xf4   :  { %v145_v24 = vshrl.u32 %v365_v22, %v142_v18  ;;  %v148_v26 = vshrl.u32 %v366_v25, %v142_v18  ;;  %v151_v29 = vshrl.u32 %v367_v28, %v142_v18  ;;  %v154_v32 = vshrl.u32 %v368_v31, %v142_v18 }
  0xf5   :  { %v157_v35 = vshrl.u32 %v369_v34, %v142_v18  ;;  %v143_v45 = vshrl.u32 %v364_v20, %v142_v18  ;;  %vm161_vm5 = vcmp.lt.s32.totalorder %v140_v19, 3  ;;  %vm160_vm6 = vcmp.lt.s32.totalorder %v140_v19, 2 }
  0xf6   :  { %v146_v37 = vor.u32 %v145_v24, %v144_v21  ;;  %v149_v38 = vor.u32 %v148_v26, %v147_v23  ;;  %v152_v39 = vor.u32 %v151_v29, %v150_v27  ;;  %v155_v40 = vor.u32 %v154_v32, %v153_v30 }
  0xf7   :  { %v158_v41 = vor.u32 %v157_v35, %v156_v33 }
  0xf8   :  { %v164_v42 = vsel %vm162_vm4, %v152_v39, 2102212464  ;;  %v167_v43 = vsel %vm159_vm3, %v146_v37, %v149_v38  ;;  %v171_v44 = vsel %vm159_vm3, %v149_v38, %v152_v39  ;;  %v168_v46 = vsel %vm162_vm4, %v155_v40, 920167782 }
  0xf9   :  { %v172_v47 = vsel %vm162_vm4, %v158_v41, 1326507024  ;;  %v169_v48 = vsel %vm161_vm5, %v152_v39, %v168_v46  ;;  %v163_v51 = vsel %vm159_vm3, %v143_v45, %v146_v37  ;;  %v165_v52 = vsel %vm161_vm5, %v149_v38, %v164_v42 }
  0xfa   :  { %v173_v49 = vsel %vm161_vm5, %v155_v40, %v172_v47  ;;  %v170_v53 = vsel %vm160_vm6, %v167_v43, %v169_v48  ;;  %v166_v59 = vsel %vm160_vm6, %v163_v51, %v165_v52 }
  0xfb   :  { %v174_v54 = vsel %vm160_vm6, %v171_v44, %v173_v49  ;;  %v409_v57 = vmul.u32.u64.low %v175_v50, %v170_v53  ;;  %v410_v58 = vmul.u32.u64.high %v175_v50, %v170_v53, %v409_v57  ;;  %v182_v61 = vmul.u32 %v175_v50, %v166_v59 }
  0xfc   :  { %v406_v55 = vmul.u32.u64.low %v175_v50, %v174_v54  ;;  %v407_v56 = vmul.u32.u64.high %v175_v50, %v174_v54, %v406_v55 }
  0xfd   :  { %v185_v60 = vadd.s32 1, %v410_v58 }
  0xfe   :  { %vm184_vm7 = vc.u32 %v407_v56, %v409_v57  ;;  %v183_v10 = vadd.s32 %v409_v57, %v407_v56 }
  0xff   :  { %v186_v62 = vsel %vm184_vm7, %v185_v60, %v410_v58 }
 0x100   :  { %v187_v63 = vadd.s32 %v186_v62, %v182_v61 }
 0x102   :  { %v188_v0 = vadd.s32 536870912, %v187_v63 }
 0x104   :  { %v189_v1 = vshrl.u32 %v188_v0, 30 }
 0x106   :  { %v190_v2 = vshll.u32 %v189_v1, 30  ;;  %v213_v24 = vsub.s32 4, %v189_v1 }
 0x108   :  { %v191_v3 = vsub.s32 %v187_v63, %v190_v2  ;;  %v214_v27 = vsel %vm129_vm9, %v213_v24, %v189_v1 }
 0x109   :  { %v216_v28 = vsel %vm128_vm10, 0, %v214_v27 }
 0x10a   :  { %v193_v4 = vsub.s32 0, %v191_v3  ;;  %v220_v29 = vadd.s32 3, %v216_v28 }
 0x10c   :  { %v252_v5 = vmin.u32 %v193_v4, %v191_v3  ;;  %v221_v30 = vand.u32 3, %v220_v29 }
 0x10e   :  { %v195_v6 = vclz %v252_v5  ;;  %vm226_vm11 = vcmp.eq.s32.totalorder %v221_v30, 2  ;;  %vm223_vm12 = vcmp.eq.s32.totalorder %v221_v30, 0  ;;  %vm222_vm13 = vcmp.lt.s32.totalorder %v221_v30, 2 }
 0x110   :  { %v253_v7 = vadd.s32 4294967294, %v195_v6 }
 0x112   :  { %vm254_vm8 = vcmp.lt.s32.totalorder %v253_v7, 0 }
 0x113   :  { %v198_v9 = vsel %vm254_vm8, 0, %v253_v7 }
 0x114   :  { %v199_v11 = vsub.s32 32, %v198_v9  ;;  %v203_v12 = vsub.s32 4294967266, %v198_v9  ;;  %v200_v13 = vshll.u32 %v191_v3, %v198_v9 }
 0x116   :  { %v201_v15 = vshrl.u32 %v183_v10, %v199_v11  ;;  %v204_v16 = vadd.s32 127, %v203_v12 }
 0x118   :  { %v202_v17 = vor.u32 %v201_v15, %v200_v13  ;;  %v205_v18 = vshll.u32 %v204_v16, 23 }
 0x11a   :  { %v206_v19 = vor.u32 4788187, %v205_v18  ;;  %v209_v21 = vcvt.s32.f32 %v202_v17 }
 0x11c   :  { %v207_v20 = vand.u32 2147483647, %v206_v19 }
 0x11e   :  { %v210_v22 = vmul.f32 %v209_v21, %v207_v20 }
 0x120   :  { %v211_v23 = vxor.u32 2147483648, %v210_v22 }
 0x122   :  { %v212_v25 = vsel %vm129_vm9, %v211_v23, %v210_v22 }
 0x123   :  { %v215_v26 = vsel %vm128_vm10, %v400_v8, %v212_v25 }
 0x124   :  { %288 = vcosq.f32 %v215_v26 }
 0x125   :  { %290 = vsinq.f32 %v215_v26 }
 0x131   :  { %v289_v31 = vpop.eup %288 }
 0x132   :  { %v291_v32 = vpop.eup %290  ;;  %v227_v33 = vxor.u32 2147483648, %v289_v31 }
 0x133   :  { %v224_v34 = vxor.u32 2147483648, %v291_v32 }
 0x134   :  { %v228_v35 = vsel %vm226_vm11, %v227_v33, %v291_v32 }
 0x135   :  { %v225_v36 = vsel %vm223_vm12, %v289_v31, %v224_v34 }
 0x136   :  { %v229_v14 = vsel %vm222_vm13, %v225_v36, %v228_v35 }
 0x137   :  { %v230_v37 = vsel %vm219_vm14, nan, %v229_v14 }
 0x138   :  { %v231_v38 = vmul.f32 1.7320508, %v230_v37 }
 0x13a   :  { %232 = vst [vmem:[#allocation7] sm:$0xff] %v231_v38 }
 0x13b   :  { %343 = shalt.err (!%p340_p0)
}
 0x13c   :  { %242 = dma.vmem_to_hbm [thread:$0]  %s240_s24, 128, %s427_s3, [#allocation4]  }
 0x13d   :  { %356 = dma.done.wait [#allocation4], 128  }
 0x13e   :  { %357 = vsyncadd [#allocation4], 4294967168 }
 0x13f   :  { %246 = vsyncpa [#allocation3], 1 }
 0x140   :  { %247 = vsyncpa [#allocation6], 1 }
 0x141   :  { %248 = vsyncpa [#allocation4], 1 }

</bundles_post_ra>
